<compile_context>
chip_gen: v6e
topology: v6e:2x2x1
jax: 0.10.0
libtpu: 0.0.40
codegen_flags: <defaults>
</compile_context>

<pallas_src>
import jax
import jax.numpy as jnp
from jax.experimental import pallas as pl
from jax.experimental.pallas import tpu as pltpu


def _round_up(n, m):
    return ((n + m - 1) // m) * m


def _device_kind():
    try:
        return jax.devices()[0].device_kind.lower()
    except Exception:
        return ""


def _default_elementwise_dtype():
    """bf16 epilogues on bf16-VPU chips (v6e/v7x); f32 on older chips."""
    kind = _device_kind()
    if any(v in kind for v in ("v2", "v3", "v4", "v5")):
        return jnp.float32
    return jnp.bfloat16


def _num_tensorcores():
    """v7x has 2 TensorCores per chip; earlier chips have 1."""
    return 2 if "v7" in _device_kind() else 1


def _pick_tile(batch, block_m):
    """Sublane-aligned batch tile.

    Big tiles amortize per-grid-step overhead; on multi-TC chips the tile is
    capped so the 'parallel' batch axis produces >=4 grid steps and both
    TensorCores get work.
    """
    tm = _round_up(max(1, min(block_m, batch)), 8)
    if _num_tensorcores() >= 2:
        cap = _round_up(pl.cdiv(batch, 4), 8)
        tm = max(8, min(tm, cap))
    return tm


def _mlp_branch_kernel(x_ref, w1_ref, b1_ref, w2_ref, b2_ref, w3_ref, b3_ref,
                       o_ref):
    """Fused Linear->ReLU->Linear->ReLU->Linear on one batch tile.

    Matmul operands use the weight dtype (bf16); accumulation is f32.
    The h1/h2 bias+ReLU epilogues run in the bias dtype (bf16 on v6e/v7x,
    f32 on v5e).  The final bias-add stays f32.
    """
    mm_dtype = w1_ref.dtype     # matmul operand dtype
    ew_dtype = b1_ref.dtype     # elementwise epilogue dtype (h1/h2)

    x = x_ref[...]
    if x.dtype != mm_dtype:     # no-op if the backbone already emits bf16
        x = x.astype(mm_dtype)

    h1 = jnp.dot(x, w1_ref[...], preferred_element_type=jnp.float32)
    h1 = jnp.maximum(h1.astype(ew_dtype) + b1_ref[...], 0)        # (tm, 128)

    h2 = jnp.dot(h1.astype(mm_dtype), w2_ref[...],
                 preferred_element_type=jnp.float32)
    h2 = jnp.maximum(h2.astype(ew_dtype) + b2_ref[...], 0)        # (tm, 256)

    h3 = jnp.dot(h2.astype(mm_dtype), w3_ref[...],
                 preferred_element_type=jnp.float32)               # (tm, out)
    o_ref[...] = (h3 + b3_ref[...]).astype(o_ref.dtype)


def mlp_branch(x, w1, b1, w2, b2, w3, b3, *, block_m=2048,
               out_dtype=jnp.float32):
    """Run one task branch.

    Args:
      x:       (batch, in_dim) features (any float dtype; bf16 avoids a cast).
      w1..w3:  (in, out) weights, already transposed + cast to compute dtype.
      b1, b2:  (1, out) biases in the elementwise-epilogue dtype.
      b3:      (1, out_dim) float32 bias.
      block_m: max rows per grid step (batch tile).
      out_dtype: output dtype (use bf16 if the consumer tolerates it to halve
                 the dominant output write).
    """
    batch, in_dim = x.shape
    h1_dim = w1.shape[1]
    h2_dim = w2.shape[1]
    out_dim = w3.shape[1]

    tm = _pick_tile(batch, block_m)
    grid = (pl.cdiv(batch, tm),)    # ragged last tile handled by Pallas

    # Weights/biases: same block every step -> stay VMEM-resident.
    resident = lambda shape: pl.BlockSpec(shape, lambda i: (0, 0))

    flops = 2 * batch * (in_dim * h1_dim + h1_dim * h2_dim + h2_dim * out_dim)
    w_bytes = sum(int(a.size) * a.dtype.itemsize
                  for a in (w1, b1, w2, b2, w3, b3))
    bytes_accessed = (batch * in_dim * x.dtype.itemsize
                      + batch * out_dim * jnp.dtype(out_dtype).itemsize
                      + w_bytes)

    return pl.pallas_call(
        _mlp_branch_kernel,
        out_shape=jax.ShapeDtypeStruct((batch, out_dim), out_dtype),
        grid=grid,
        in_specs=[
            pl.BlockSpec((tm, in_dim), lambda i: (i, 0)),   # x tiled on batch
            resident((in_dim, h1_dim)), resident((1, h1_dim)),
            resident((h1_dim, h2_dim)), resident((1, h2_dim)),
            resident((h2_dim, out_dim)), resident((1, out_dim)),
        ],
        out_specs=pl.BlockSpec((tm, out_dim), lambda i: (i, 0)),
        compiler_params=pltpu.CompilerParams(
            # Independent batch tiles -> shard across both TCs on v7x.
            dimension_semantics=("parallel",),
        ),
        cost_estimate=pl.CostEstimate(
            flops=flops, transcendentals=0, bytes_accessed=bytes_accessed),
    )(x, w1, b1, w2, b2, w3, b3)


def init_branch_params(key, input_dim, out_dim):
    """PyTorch-layout (out, in) float32 params for one branch (reference)."""
    dims = [(128, input_dim), (256, 128), (out_dim, 256)]
    params = []
    for out_d, in_d in dims:
        key, kw, kb = jax.random.split(key, 3)
        bound = 1.0 / jnp.sqrt(in_d)
        w = jax.random.uniform(kw, (out_d, in_d), jnp.float32, -bound, bound)
        b = jax.random.uniform(kb, (out_d,), jnp.float32, -bound, bound)
        params.append((w, b))
    return params, key


def prep_branch_for_kernel(params, compute_dtype, elementwise_dtype):
    """One-time weight prep: transpose to (in, out), cast; no per-call work."""
    (w1, b1), (w2, b2), (w3, b3) = params
    w1k = w1.T.astype(compute_dtype)
    w2k = w2.T.astype(compute_dtype)
    w3k = w3.T.astype(compute_dtype)
    b1k = b1.reshape(1, -1).astype(elementwise_dtype)
    b2k = b2.reshape(1, -1).astype(elementwise_dtype)
    b3k = b3.reshape(1, -1).astype(jnp.float32)
    return (w1k, b1k, w2k, b2k, w3k, b3k), w3.shape[0]


class MultiTaskModelPallas:
    """JAX/Pallas port of MultiTaskModel; backbone is a plain JAX callable."""

    def __init__(self, backbone, input_dim, ind, num_predict_list, key,
                 compute_dtype=jnp.bfloat16, elementwise_dtype=None,
                 block_m=2048, out_dtype=jnp.float32):
        if not 0 <= ind < len(num_predict_list):
            raise ValueError(
                f"ind={ind} out of range for {len(num_predict_list)} branches")
        if elementwise_dtype is None:
            elementwise_dtype = _default_elementwise_dtype()
        self.backbone = backbone
        self.num_tasks = len(num_predict_list)
        self.ind = ind
        self.block_m = block_m
        self.out_dtype = out_dtype
        self.compute_dtype = compute_dtype
        self.elementwise_dtype = elementwise_dtype
        self.task_branches = []      # PyTorch-layout f32 params (reference)
        self.kernel_branches = []    # pre-transposed / cast params
        for out_dim in num_predict_list:
            params, key = init_branch_params(key, input_dim, out_dim)
            self.task_branches.append(params)
            self.kernel_branches.append(
                prep_branch_for_kernel(params, compute_dtype,
                                       elementwise_dtype))

    def __call__(self, x):
        # TODO(synk): backbone is an arbitrary external module in the PyTorch
        # spec; it is treated as an opaque JAX callable here (identity in the
        # demo). If it can emit bf16 features, the in-kernel x cast vanishes.
        features = self.backbone(x)
        (w1, b1, w2, b2, w3, b3), _ = self.kernel_branches[self.ind]
        return mlp_branch(features, w1, b1, w2, b2, w3, b3,
                          block_m=self.block_m, out_dtype=self.out_dtype)


def reference_forward(x, params, compute_dtype=jnp.bfloat16,
                      elementwise_dtype=None):
    """Pure-JAX reference mirroring the kernel's dtype choices."""
    if elementwise_dtype is None:
        elementwise_dtype = _default_elementwise_dtype()
    (w1, b1), (w2, b2), (w3, b3) = params

    def dot(h, w):
        return jnp.dot(h.astype(compute_dtype), w.T.astype(compute_dtype),
                       preferred_element_type=jnp.float32)

    h = jnp.maximum(dot(x, w1).astype(elementwise_dtype)
                    + b1.astype(elementwise_dtype), 0)
    h = jnp.maximum(dot(h, w2).astype(elementwise_dtype)
                    + b2.astype(elementwise_dtype), 0)
    return dot(h, w3) + b3.astype(jnp.float32)


if __name__ == "__main__":
    key = jax.random.PRNGKey(0)
    batch = 16
    input_dim = 32

    # backbone: identity — the ported hot path is the per-task MLP head.
    backbone = lambda x: x

    key, kx, kparams = jax.random.split(key, 3)
    x = jax.random.normal(kx, (batch, input_dim), jnp.float32)

    # block_m=8 so the tiny demo batch exercises a multi-step grid run.
    model0 = MultiTaskModelPallas(backbone, input_dim, ind=0,
                                  num_predict_list=[36, 36], key=kparams,
                                  block_m=8)
    out0 = jax.block_until_ready(model0(x))
    ref0 = reference_forward(backbone(x), model0.task_branches[0],
                             model0.compute_dtype, model0.elementwise_dtype)
    assert out0.shape == (batch, 36), out0.shape
    assert jnp.allclose(out0, ref0, atol=3e-3, rtol=3e-3), \
        float(jnp.max(jnp.abs(out0 - ref0)))

    # Second branch (ind == 1), default (large) block_m -> single/few steps.
    model1 = MultiTaskModelPallas(backbone, input_dim, ind=1,
                                  num_predict_list=[36, 36], key=kparams)
    out1 = jax.block_until_ready(model1(x))
    ref1 = reference_forward(backbone(x), model1.task_branches[1],
                             model1.compute_dtype, model1.elementwise_dtype)
    assert out1.shape == (batch, 36), out1.shape
    assert jnp.allclose(out1, ref1, atol=3e-3, rtol=3e-3), \
        float(jnp.max(jnp.abs(out1 - ref1)))

    print("KERNEL_OK")
</pallas_src>

<mosaic_0001>
module attributes {stable_mosaic.version = 11 : i64} {
  func.func @_mlp_branch_kernel(%arg0: i32, %arg1: memref<8x32xf32, #tpu.memory_space<vmem>>, %arg2: memref<32x128xbf16, #tpu.memory_space<vmem>>, %arg3: memref<1x128xbf16, #tpu.memory_space<vmem>>, %arg4: memref<128x256xbf16, #tpu.memory_space<vmem>>, %arg5: memref<1x256xbf16, #tpu.memory_space<vmem>>, %arg6: memref<256x36xbf16, #tpu.memory_space<vmem>>, %arg7: memref<1x36xf32, #tpu.memory_space<vmem>>, %arg8: memref<8x36xf32, #tpu.memory_space<vmem>>) attributes {dimension_semantics = [#tpu.dimension_semantics<parallel>], iteration_bounds = array<i64: 2>, scalar_prefetch = 0 : i64, scratch_operands = 0 : i64, tpu.core_type = #tpu.core_type<tc>, window_params = [{transform_indices = @transform_0, window_bounds = array<i64: 8, 32>}, {pipeline_mode = #tpu.pipeline_mode<synchronous>, transform_indices = @transform_1, window_bounds = array<i64: 32, 128>}, {pipeline_mode = #tpu.pipeline_mode<synchronous>, transform_indices = @transform_2, window_bounds = array<i64: 1, 128>}, {pipeline_mode = #tpu.pipeline_mode<synchronous>, transform_indices = @transform_3, window_bounds = array<i64: 128, 256>}, {pipeline_mode = #tpu.pipeline_mode<synchronous>, transform_indices = @transform_4, window_bounds = array<i64: 1, 256>}, {pipeline_mode = #tpu.pipeline_mode<synchronous>, transform_indices = @transform_5, window_bounds = array<i64: 256, 36>}, {pipeline_mode = #tpu.pipeline_mode<synchronous>, transform_indices = @transform_6, window_bounds = array<i64: 1, 36>}, {transform_indices = @transform_7, window_bounds = array<i64: 8, 36>}]} {
    %c0 = arith.constant 0 : index
    %c0_0 = arith.constant 0 : index
    %0 = vector.load %arg1[%c0, %c0_0] : memref<8x32xf32, #tpu.memory_space<vmem>>, vector<8x32xf32>
    %1 = arith.truncf %0 : vector<8x32xf32> to vector<8x32xbf16>
    %c0_1 = arith.constant 0 : index
    %c0_2 = arith.constant 0 : index
    %2 = vector.load %arg2[%c0_1, %c0_2] : memref<32x128xbf16, #tpu.memory_space<vmem>>, vector<32x128xbf16>
    %cst = arith.constant dense<0.000000e+00> : vector<8x128xf32>
    %3 = tpu.matmul %1, %2, %cst {dimension_numbers = #tpu.dot_dimension_numbers<[1], [0], [0], [1], [0, 0, 1, 1], [], []>} : vector<8x32xbf16>, vector<32x128xbf16>, vector<8x128xf32> -> vector<8x128xf32>
    %4 = arith.truncf %3 : vector<8x128xf32> to vector<8x128xbf16>
    %c0_3 = arith.constant 0 : index
    %c0_4 = arith.constant 0 : index
    %5 = vector.load %arg3[%c0_3, %c0_4] : memref<1x128xbf16, #tpu.memory_space<vmem>>, vector<1x128xbf16>
    %6 = vector.broadcast %5 : vector<1x128xbf16> to vector<8x128xbf16>
    %7 = arith.addf %4, %6 : vector<8x128xbf16>
    %cst_5 = arith.constant 0.000000e+00 : bf16
    %8 = vector.broadcast %cst_5 : bf16 to vector<8x128xbf16>
    %9 = arith.maximumf %7, %8 : vector<8x128xbf16>
    %c0_6 = arith.constant 0 : index
    %c0_7 = arith.constant 0 : index
    %10 = vector.load %arg4[%c0_6, %c0_7] : memref<128x256xbf16, #tpu.memory_space<vmem>>, vector<128x256xbf16>
    %cst_8 = arith.constant dense<0.000000e+00> : vector<8x256xf32>
    %11 = tpu.matmul %9, %10, %cst_8 {dimension_numbers = #tpu.dot_dimension_numbers<[1], [0], [0], [1], [0, 0, 1, 1], [], []>} : vector<8x128xbf16>, vector<128x256xbf16>, vector<8x256xf32> -> vector<8x256xf32>
    %12 = arith.truncf %11 : vector<8x256xf32> to vector<8x256xbf16>
    %c0_9 = arith.constant 0 : index
    %c0_10 = arith.constant 0 : index
    %13 = vector.load %arg5[%c0_9, %c0_10] : memref<1x256xbf16, #tpu.memory_space<vmem>>, vector<1x256xbf16>
    %14 = vector.broadcast %13 : vector<1x256xbf16> to vector<8x256xbf16>
    %15 = arith.addf %12, %14 : vector<8x256xbf16>
    %cst_11 = arith.constant 0.000000e+00 : bf16
    %16 = vector.broadcast %cst_11 : bf16 to vector<8x256xbf16>
    %17 = arith.maximumf %15, %16 : vector<8x256xbf16>
    %c0_12 = arith.constant 0 : index
    %c0_13 = arith.constant 0 : index
    %18 = vector.load %arg6[%c0_12, %c0_13] : memref<256x36xbf16, #tpu.memory_space<vmem>>, vector<256x36xbf16>
    %cst_14 = arith.constant dense<0.000000e+00> : vector<8x36xf32>
    %19 = tpu.matmul %17, %18, %cst_14 {dimension_numbers = #tpu.dot_dimension_numbers<[1], [0], [0], [1], [0, 0, 1, 1], [], []>} : vector<8x256xbf16>, vector<256x36xbf16>, vector<8x36xf32> -> vector<8x36xf32>
    %c0_15 = arith.constant 0 : index
    %c0_16 = arith.constant 0 : index
    %20 = vector.load %arg7[%c0_15, %c0_16] : memref<1x36xf32, #tpu.memory_space<vmem>>, vector<1x36xf32>
    %21 = vector.broadcast %20 : vector<1x36xf32> to vector<8x36xf32>
    %22 = arith.addf %19, %21 : vector<8x36xf32>
    %c0_17 = arith.constant 0 : index
    %c0_18 = arith.constant 0 : index
    %23 = vector.load %arg8[%c0_17, %c0_18] : memref<8x36xf32, #tpu.memory_space<vmem>>, vector<8x36xf32>
    tpu.vector_store %arg8[%c0_17, %c0_18], %22 {strides = array<i32>} : memref<8x36xf32, #tpu.memory_space<vmem>>, vector<8x36xf32>,
    return
  }
  func.func @transform_0(%arg0: i32) -> (i32, i32) {
    %c0_i32 = arith.constant 0 : i32
    %c0_i32_0 = arith.constant 0 : i32
    return %arg0, %c0_i32 : i32, i32
  }
  func.func @transform_1(%arg0: i32) -> (i32, i32) {
    %c0_i32 = arith.constant 0 : i32
    %c0_i32_0 = arith.constant 0 : i32
    %c0_i32_1 = arith.constant 0 : i32
    return %c0_i32, %c0_i32_0 : i32, i32
  }
  func.func @transform_2(%arg0: i32) -> (i32, i32) {
    %c0_i32 = arith.constant 0 : i32
    %c0_i32_0 = arith.constant 0 : i32
    %c0_i32_1 = arith.constant 0 : i32
    return %c0_i32, %c0_i32_0 : i32, i32
  }
  func.func @transform_3(%arg0: i32) -> (i32, i32) {
    %c0_i32 = arith.constant 0 : i32
    %c0_i32_0 = arith.constant 0 : i32
    %c0_i32_1 = arith.constant 0 : i32
    return %c0_i32, %c0_i32_0 : i32, i32
  }
  func.func @transform_4(%arg0: i32) -> (i32, i32) {
    %c0_i32 = arith.constant 0 : i32
    %c0_i32_0 = arith.constant 0 : i32
    %c0_i32_1 = arith.constant 0 : i32
    return %c0_i32, %c0_i32_0 : i32, i32
  }
  func.func @transform_5(%arg0: i32) -> (i32, i32) {
    %c0_i32 = arith.constant 0 : i32
    %c0_i32_0 = arith.constant 0 : i32
    %c0_i32_1 = arith.constant 0 : i32
    return %c0_i32, %c0_i32_0 : i32, i32
  }
  func.func @transform_6(%arg0: i32) -> (i32, i32) {
    %c0_i32 = arith.constant 0 : i32
    %c0_i32_0 = arith.constant 0 : i32
    %c0_i32_1 = arith.constant 0 : i32
    return %c0_i32, %c0_i32_0 : i32, i32
  }
  func.func @transform_7(%arg0: i32) -> (i32, i32) {
    %c0_i32 = arith.constant 0 : i32
    %c0_i32_0 = arith.constant 0 : i32
    return %arg0, %c0_i32 : i32, i32
  }
}

</mosaic_0001>

<bundles_post_ra>
// kernel: tpu_custom_call.1
= control target key start
LH: loop header
LB: loop body
LE: loop exit
PB: predicated region body
PF: predicated region fallthrough
CT: control target
= control target key end

     0   :  { %12 = vsyncpa [#allocation3], 0  ;;  %s1259_s0 = inlined_call_operand.vmem [shape: f32[16,32], index: 0, kind: input, shape index: {}]   ;;  %s1260_s1 = inlined_call_operand.vmem [shape: bf16[32,128], index: 1, kind: input, shape index: {}]   ;;  %s1261_s2 = inlined_call_operand.vmem [shape: bf16[1,128], index: 2, kind: input, shape index: {}]   ;;  %s1262_s3 = inlined_call_operand.vmem [shape: bf16[128,256], index: 3, kind: input, shape index: {}]   ;;  %s1263_s4 = inlined_call_operand.vmem [shape: bf16[1,256], index: 4, kind: input, shape index: {}]   ;;  %s1264_s5 = inlined_call_operand.vmem [shape: bf16[256,36], index: 5, kind: input, shape index: {}]   ;;  %s1265_s6 = inlined_call_operand.vmem [shape: f32[1,36], index: 6, kind: input, shape index: {}]   ;;  %s1266_s7 = inlined_call_operand.hbm [shape: f32[16,36], index: 7, kind: output, shape index: {}]  }
   0x1   :  { %14 = vsyncpa [#allocation3 + $0x1], 0  ;;  %s1051_s24 = smov 0   ;;  %s1053_s25 = smov 0  }
   0x2   :  { %s1055_s26 = smov 0   ;;  %s1057_s27 = smov 0  }
   0x3 LB: > { %s1072_s28 = sadd.s32 4294967295, %s1004_s27   ;;  %s779_s29 = sadd.s32 4294967294, %s1004_s27   ;;  %s1004_s27 = sphi %s1057_s27, %s1272_s27   ;;  %s1000_s26 = sphi %s1055_s26, %s1271_s26   ;;  %s996_s25 = sphi %s1053_s25, %s1270_s25   ;;  %s992_s24 = sphi %s1051_s24, %s1269_s24  }
   0x4   : > { %s1076_s30 = sadd.s32 1, %s1004_s27   ;;  %s179_s8 = sadd.s32 1, %s1000_s26 }
   0x5   : > { %s176_s9 = ssub.s32 %s1004_s27, %s1076_s30  ;;  %p189_p0 = scmp.ne.s32.totalorder %s1000_s26, %s996_s25 }
   0x6   : > { %p177_p1 = scmp.eq.s32.totalorder %s176_s9, 0  ;;  %p190_p2 = scmp.eq.s32.totalorder %s1072_s28, 1 }
   0x7   : > { %p195_p3 = scmp.ne.s32.totalorder %s996_s25, %s992_s24  ;;  %p196_p4 = scmp.eq.s32.totalorder %s779_s29, 1 }
   0x8   : > { %s1087_s10 = scalar_select %p177_p1, %s1000_s26, %s179_s8  }
   0x9   : > { %p1089_p5 = por %p190_p2, %p189_p0  ;;  %p1093_p6 = por %p196_p4, %p195_p3 }
   0xa   : > { %p782_p7 = scmp.ge.s32.totalorder %s1004_s27, 1  ;;  %p239_p8 = scmp.lt.s32.totalorder %s1004_s27, 3 }
   0xc   : > { %p240_p9 = pnand %p782_p7, %p239_p8 }
   0xd   : > { %p270_p10 = scmp.lt.s32.totalorder (!%p240_p9), %s1072_s28, 1  ;;  %s267_s20 = sand.u32 (!%p240_p9), 1, %s996_s25  }
   0xe   : > { %243 = sbr.rel (%p240_p9) target bundleno = 641 (0x281), region = 48  ;;  %s823_s29 = sshll.u32 (!%p240_p9), %s1072_s28, 7 }
   0xf   : > { %s1224_s15 = scalar_lea.hbm (!%p240_p9), %s1266_s7, %s823_s29  ;;  %s707_s16 = scalar_lea.sflag (!%p240_p9), [#allocation3], %s267_s20 }
  0x13   : > { %v902_v0 = vld [vmem:[%s1260_s1 + $0x8] sm:$0xff]   ;;  %v1006_v1 = vmov 0.0   ;;  %v903_v2 = vld [vmem:[%s1260_s1] sm:$0xff]   ;;  %vm1007_vm0 = vmmov 0   ;;  %v904_v3 = vld [vmem:[%s1262_s3 + $0x74] ss:$8 sps:$4 sm:$0xff]   ;;  %v342_v34 = vlaneseq }
  0x14   : > { %851 = vmatprep.subr.bf16.mxu0 %v1006_v1  ;;  %855 = vmatprep.mubr.msk.bf16.mxu0 %vm1007_vm0, %v1006_v1  ;;  %v906_v4 = vld [vmem:[%s1262_s3 + $0x70] ss:$8 sps:$4 sm:$0xff]   ;;  %s271_s21 = scalar_select %p270_p10, %s1072_s28, 1  ;;  %v907_v5 = vld [vmem:[%s1262_s3 + $0x64] ss:$8 sps:$4 sm:$0xff]   ;;  %vm293_vm1 = vcmask 261120  }
  0x15   : > { %852 = vmatpush3.bf16.msra.mxu0 %v902_v0  ;;  %444 = vmatprep.subr.bf16.mxu1 %v904_v3  ;;  %v909_v6 = vld [vmem:[%s1262_s3 + $0x60] ss:$8 sps:$4 sm:$0xff]   ;;  %v910_v7 = vld [vmem:[%s1262_s3 + $0x54] ss:$8 sps:$4 sm:$0xff]   ;;  %v912_v10 = vld [vmem:[%s1262_s3 + $0x50] ss:$8 sps:$4 sm:$0xff]  }
  0x16   : > { %853 = vmatprep.subr.bf16.mxu0 %v1006_v1  ;;  %445 = vmatpush1.bf16.msra.mxu1 %v906_v4  ;;  %s784_s9 = sshll.u32 %s271_s21, 3  ;;  %v913_v11 = vld [vmem:[%s1262_s3 + $0x44] ss:$8 sps:$4 sm:$0xff]   ;;  %v915_v12 = vld [vmem:[%s1262_s3 + $0x40] ss:$8 sps:$4 sm:$0xff]   ;;  %v1008_v21 = vmov 0  }
  0x17   : > { %446 = vmatprep.subr.bf16.mxu1 %v907_v5  ;;  %s273_s17 = scalar_lea.vmem %s1259_s0, %s784_s9  ;;  %v916_v13 = vld [vmem:[%s1262_s3 + $0x34] ss:$8 sps:$4 sm:$0xff]   ;;  %v918_v14 = vld [vmem:[%s1262_s3 + $0x30] ss:$8 sps:$4 sm:$0xff]   ;;  %v919_v15 = vld [vmem:[%s1262_s3 + $0x24] ss:$8 sps:$4 sm:$0xff]   ;;  %476 = vmatprep.mubr.bf16.mxu1 %v1008_v21 }
  0x18   : > { %v275_v8 = vld [vmem:[%s273_s17] sm:$0xff]  ;;  %v922_v17 = vld [vmem:[%s1262_s3 + $0x14] ss:$8 sps:$4 sm:$0xff]   ;;  %v924_v18 = vld [vmem:[%s1262_s3 + $0x10] ss:$8 sps:$4 sm:$0xff]   ;;  %v343_v35 = vshrl.u32 %v342_v34, 7 }
  0x19   : > { %854 = vmatpush3.bf16.msra.mxu0 %v903_v2  ;;  %v276_v9 = vpack.c.bf16 %v275_v8, %v275_v8  ;;  %v921_v16 = vld [vmem:[%s1262_s3 + $0x20] ss:$8 sps:$4 sm:$0xff]   ;;  %v925_v19 = vld [vmem:[%s1262_s3 + $0x4] ss:$8 sps:$4 sm:$0xff]   ;;  %v928_v22 = vld [vmem:[%s1264_s5 + $0x78] sm:$0xff]   ;;  %s783_s21 = sshll.u32 %s267_s20, 3 }
  0x1a   : > { %447 = vmatpush1.bf16.msra.mxu1 %v909_v6  ;;  %v927_v20 = vld [vmem:[%s1262_s3] ss:$8 sps:$4 sm:$0xff]   ;;  %v929_v23 = vld [vmem:[%s1264_s5 + $0x38] sm:$0xff]   ;;  %v930_v24 = vld [vmem:[%s1264_s5 + $0x70] sm:$0xff]   ;;  %829 = vmatprep.subr.bf16.mxu0 %v928_v22  ;;  %v344_v38 = vsub.s32 0, %v343_v35  ;;  %s269_s8 = scalar_lea.vmem [#allocation2], %s783_s21 }
  0x1b   : > { %448 = vmatprep.subr.bf16.mxu1 %v910_v7  ;;  %v931_v25 = vld [vmem:[%s1264_s5 + $0x30] sm:$0xff]   ;;  %v932_v26 = vld [vmem:[%s1264_s5 + $0x68] sm:$0xff]   ;;  %v934_v28 = vld [vmem:[%s1264_s5 + $0x60] sm:$0xff]   ;;  %v1009_v51 = vmov 1966171168   ;;  %s720_s9 = sshll.u32 %s269_s8, 4  ;;  %s721_s9 = int_to_ptr.vmem [resolvable:$true] %s720_s9 }
  0x1c   : > { %856 = vmatmul.mubr.msk.bf16.vlgmr.msra.gmra.mxu0 %vm293_vm1, %v276_v9  ;;  %v933_v27 = vld [vmem:[%s1264_s5 + $0x28] sm:$0xff]   ;;  %v935_v29 = vld [vmem:[%s1264_s5 + $0x20] sm:$0xff]   ;;  %v936_v30 = vld [vmem:[%s1264_s5 + $0x58] sm:$0xff]   ;;  %v498_v52 = vunpack.c.l.s4 %v1009_v51  ;;  %vm704_vm2 = vcmask 293888   ;;  %s944_s17 = scalar_lea.vmem %s721_s9, 128  ;;  %s1010_s28 = smov [#allocation2]  }
  0x1d   : > { %830 = vmatpush3.bf16.msra.mxu0 %v929_v23  ;;  %v937_v31 = vld [vmem:[%s1264_s5 + $0x18] sm:$0xff]   ;;  %v938_v32 = vld [vmem:[%s1264_s5 + $0x50] sm:$0xff]   ;;  %v338_v36 = vld [vmem:[%s1261_s2] sm:$0x1]  ;;  %p945_p11 = scmp.ne.s32.totalorder %s721_s9, %s944_s17  ;;  %s948_s18 = sshll.u32 %s1010_s28, 4  ;;  %s949_s18 = int_to_ptr.vmem [resolvable:$false] %s948_s18 }
  0x1e   : > { %449 = vmatpush1.bf16.msra.mxu1 %v912_v10  ;;  %831 = vmatprep.subr.bf16.mxu0 %v930_v24  ;;  %v939_v33 = vld [vmem:[%s1264_s5 + $0x10] sm:$0xff]   ;;  %v340_v37 = vpack.i.b16 %v338_v36, %v338_v36  ;;  %v940_v47 = vld [vmem:[%s1264_s5 + $0x48] sm:$0xff]   ;;  %v942_v49 = vld [vmem:[%s1264_s5 + $0x40] sm:$0xff]   ;;  %v499_v53 = vunpack.c.0.s8 %v498_v52  ;;  %s950_s19 = scalar_lea.vmem %s949_s18, 256  ;;  %p951_p0 = scmp.lt.s32.totalorder %s721_s9, %s949_s18 }
  0x1f   : > { %450 = vmatprep.subr.bf16.mxu1 %v913_v11  ;;  %v941_v48 = vld [vmem:[%s1264_s5 + $0x8] sm:$0xff]   ;;  %v943_v50 = vld [vmem:[%s1264_s5] sm:$0xff]   ;;  %p946_p12 = pnand %p945_p11, %p1089_p5  ;;  %p952_p1 = scmp.lt.s32.totalorder %s950_s19, %s944_s17 }
  0x20   : > { %v345_v39 = vrot.slane %v340_v37, %v344_v38  ;;  %v804_v54 = vld.sshfl [vmem:[%s1263_s4] sm:$0x11 pattern:$0x75316420]  ;;  %v502_v55 = vsub.s32 %v499_v53, %v343_v35 }
  0x21   : > { %832 = vmatpush3.bf16.msra.mxu0 %v931_v25  ;;  %v496_v56 = vcombine.high %v804_v54, %v804_v54  ;;  %v805_v10 = vld [vmem:[%s1265_s6] ss:$0 sm:$0xff]  ;;  %p947_p13 = pneg %p946_p12  ;;  %p953_p2 = por %p952_p1, %p951_p0 }
  0x22   : > { %451 = vmatpush1.bf16.msra.mxu1 %v915_v12  ;;  %833 = vmatprep.subr.bf16.mxu0 %v932_v26  ;;  %v503_v57 = vrot.slane %v804_v54, %v502_v55 }
  0x23   : > { %452 = vmatprep.subr.bf16.mxu1 %v916_v13  ;;  %v510_v58 = vrot.slane %v496_v56, %v502_v55  ;;  %p954_p3 = pnand %p953_p2, %p947_p13 }
  0x24   : > { %v512_v59 = vpack.i.b16 %v503_v57, %v503_v57 }
  0x25   : > { %834 = vmatpush3.bf16.msra.mxu0 %v933_v27  ;;  %v519_v60 = vpack.i.b16 %v510_v58, %v510_v58 }
  0x26   : > { %453 = vmatpush1.bf16.msra.mxu1 %v918_v14  ;;  %835 = vmatprep.subr.bf16.mxu0 %v934_v28  ;;  %v517_v62 = vrot.slane %v512_v59, %v344_v38 }
  0x27   : > { %454 = vmatprep.subr.bf16.mxu1 %v919_v15  ;;  %v524_v0 = vrot.slane %v519_v60, %v344_v38 }
  0x29   : > { %836 = vmatpush3.bf16.msra.mxu0 %v935_v29 }
  0x2a   : > { %455 = vmatpush1.bf16.msra.mxu1 %v921_v16  ;;  %837 = vmatprep.subr.bf16.mxu0 %v936_v30 }
  0x2b   : > { %456 = vmatprep.subr.bf16.mxu1 %v922_v17 }
  0x2d   : > { %838 = vmatpush3.bf16.msra.mxu0 %v937_v31 }
  0x2e   : > { %457 = vmatpush1.bf16.msra.mxu1 %v924_v18  ;;  %839 = vmatprep.subr.bf16.mxu0 %v938_v32 }
  0x2f   : > { %458 = vmatprep.subr.bf16.mxu1 %v925_v19 }
  0x31   : > { %840 = vmatpush3.bf16.msra.mxu0 %v939_v33 }
  0x32   : > { %459 = vmatpush1.bf16.msra.mxu1 %v927_v20  ;;  %841 = vmatprep.subr.bf16.mxu0 %v940_v47 }
  0x35   : > { %842 = vmatpush3.bf16.msra.mxu0 %v941_v48 }
  0x36   : > { %843 = vmatprep.subr.bf16.mxu0 %v942_v49 }
  0x39   : > { %844 = vmatpush3.bf16.msra.mxu0 %v943_v50 }
  0xdc   : > { %v331_v40 = vpop.f32.mrf.mxu0 }
  0xdd   : > { %v337_v41 = vpack.c.bf16 %v331_v40, %v331_v40 }
  0xde   : > { %v857_v42 = vpop.f32.mrf.mxu0 }
  0xdf   : > { %v346_v43 = vadd.bf16 %v345_v39, %v337_v41 }
  0xe0   : > { %v334_v44 = vpop.f32.mrf.mxu0 }
  0xe1   : > { %v347_v45 = vmax.bf16 %v1008_v21, %v346_v43 }
  0xe2   : > { %v858_v46 = vpop.f32.mrf.mxu0 }
  0xe3   : > { %477 = vmatmul.mubr.bf16.vlgmr.msra.gmra.mxu1 %v347_v45 }
 0x1a3   : > { %v478_v61 = vpop.f32.mrf.mxu1 }
 0x1a4   : > { %v485_v63 = vpack.c.bf16 %v478_v61, %v478_v61 }
 0x1a5   : > { %v480_v1 = vpop.f32.mrf.mxu1 }
 0x1a6   : > { %v486_v2 = vpack.c.bf16 %v480_v1, %v480_v1  ;;  %v525_v3 = vadd.bf16 %v517_v62, %v485_v63 }
 0x1a7   : > { %v482_v4 = vpop.f32.mrf.mxu1 }
 0x1a8   : > { %v526_v5 = vadd.bf16 %v524_v0, %v486_v2  ;;  %v527_v8 = vmax.bf16 %v1008_v21, %v525_v3 }
 0x1a9   : > { %v483_v6 = vpop.f32.mrf.mxu1 }
 0x1aa   : > { %v528_v7 = vmax.bf16 %v1008_v21, %v526_v5 }
 0x1ac   : > { %696 = vmatprep.mubr.bf16.mxu0 %v528_v7 }
 0x1ad   : > { %697 = vmatmul.mubr.bf16.vlgmr.msra.gmra.mxu0 %v527_v8 }
 0x26d   : > { %v845_v9 = vpop.f32.mrf.mxu0 }
 0x26f   : > { %v846_v11 = vpop.f32.mrf.mxu0 }
 0x270   : > { %v847_v12 = vadd.f32 %v846_v11, %v845_v9 }
 0x271   : > { %v848_v13 = vpop.f32.mrf.mxu0 }
 0x272   : > { %v699_v14 = vadd.f32 %v847_v12, %v805_v10 }
 0x273   : > { %v849_v15 = vpop.f32.mrf.mxu0 }
 0x274   : > { %705 = vst.msk [vmem:[%s269_s8] sm:$0xff] %vm704_vm2, %v699_v14 }
 0x275   : > { %957 = shalt.err (!%p954_p3)
}
 0x276   : > { %s958_s21 = scalar_lea.hbm %s1224_s15, 128  ;;  %s962_s23 = scalar_lea.hbm %s1266_s7, 256 }
 0x277   : > { %p959_p4 = scmp.ne.s32.totalorder %s1224_s15, %s958_s21  ;;  %p963_p9 = scmp.lt.s32.totalorder %s1224_s15, %s1266_s7 }
 0x278   : > { %p964_p10 = scmp.lt.s32.totalorder %s962_s23, %s958_s21 }
 0x279   : > { %p960_p7 = pnand %p959_p4, %p1089_p5 }
 0x27a   : > { %p965_p11 = por %p964_p10, %p963_p9 }
 0x27b   : > { %p961_p8 = pneg %p960_p7 }
 0x27d   : > { %p966_p12 = pnand %p965_p11, %p961_p8 }
 0x27f   : > { %969 = shalt.err (!%p966_p12)
}
 0x280   : > { %859 = dma.vmem_to_hbm [thread:$0]  (%p1089_p5), %s721_s9, 128, %s1224_s15, %s707_s16  }
 0x281 PF: > { %p865_p13 = scmp.ge.s32.totalorder %s1004_s27, 2  ;;  %s732_s13 = sand.u32 1, %s992_s24  }
 0x282   : > { %s733_s14 = scalar_lea.sflag [#allocation3], %s732_s13 }
 0x283   : > { %p862_p0 = pnand %p865_p13, %p1093_p6 }
 0x285   : > { %p863_p1 = pneg %p862_p0 }
 0x287   : > { %987 = dma.done.wait (%p863_p1), %s733_s14, 128  }
 0x288   : > { %989 = vsyncadd (%p863_p1), %s733_s14, 4294967168  ;;  %p17_p2 = scmp.ge.s32.totalorder %s1076_s30, 4   ;;  %s1269_s24 = smov %s996_s25 }
 0x289   : > { %s1270_s25 = smov %s1000_s26  ;;  %s1271_s26 = smov %s1087_s10 }
 0x28a   : > { %s1272_s27 = smov %s1076_s30  ;;  %19 = sbr.rel (!%p17_p2) target bundleno = 3 (0x3), region = 83 }
 0x28f   :  { %738 = vsyncpa [#allocation3], 1 }
 0x290   :  { %740 = vsyncpa [#allocation3 + $0x1], 1 }

</bundles_post_ra>
